<compile_context>
chip_gen: v7x
topology: tpu7x:2x2x1
jax: 0.10.0
libtpu: 0.0.40
codegen_flags: <defaults>
</compile_context>

<pallas_src>
import functools
import math

import numpy as np
import jax
import jax.numpy as jnp
from jax.experimental import pallas as pl
from jax.experimental.pallas import tpu as pltpu


# ---------------------------------------------------------------------------
# Kernel 1: fused complex K/V projection — computed once per token.
# ---------------------------------------------------------------------------
def _kv_proj_kernel(x_ref, wkv_ref, bkv_ref, kv_ref, *, compute_dtype):
    x = x_ref[0].astype(compute_dtype)                                  # (TK, 2D)
    kv_ref[0] = (jnp.dot(x, wkv_ref[...], preferred_element_type=jnp.float32)
                 + bkv_ref[...]).astype(kv_ref.dtype)                   # (TK, 4D)


# ---------------------------------------------------------------------------
# Kernel 2: flash-style attention over pre-projected K/V tiles, with the
# fused Q projection (kv==0) and fused complex out-projection (kv==last).
# ---------------------------------------------------------------------------
def _attn_kernel(xq_ref, kv_ref, wq_ref, bq_ref, wo_ref, bo_ref, out_ref,
                 q_scr, m_scr, l_scr, acc_scr,
                 *, num_heads, head_dim, compute_dtype, approx_recip):
    f32 = jnp.float32
    cd = compute_dtype
    D = num_heads * head_dim
    d2 = 2 * head_dim
    ki = pl.program_id(2)

    @pl.when(ki == 0)
    def _init():
        # Q projection once per (batch, q-tile); scale already folded in wq/bq.
        xq = xq_ref[0].astype(cd)                                       # (TQ, 2D)
        q_scr[...] = (jnp.dot(xq, wq_ref[...], preferred_element_type=f32)
                      + bq_ref[...]).astype(cd)
        m_scr[...] = jnp.full(m_scr.shape, -jnp.inf, dtype=m_scr.dtype)
        l_scr[...] = jnp.zeros(l_scr.shape, dtype=l_scr.dtype)
        acc_scr[...] = jnp.zeros(acc_scr.shape, dtype=acc_scr.dtype)

    # Static head loop; every head is one contiguous 2d-wide lane slice, so
    # Re(q . conj(k)) fuses into a single K=2d contraction and p @ [vr|vi]
    # produces real+imag head outputs in one dot.
    for h in range(num_heads):
        sl = slice(h * d2, (h + 1) * d2)
        q_h = q_scr[:, sl]                                              # (TQ, 2d)
        k_h = kv_ref[0, :, h * d2:(h + 1) * d2]                         # (TK, 2d)
        v_h = kv_ref[0, :, 2 * D + h * d2: 2 * D + (h + 1) * d2]        # (TK, 2d)

        s = jax.lax.dot_general(q_h, k_h, (((1,), (1,)), ((), ())),
                                preferred_element_type=f32)             # (TQ, TK)

        m_prev = m_scr[h]                                               # (TQ, 1)
        m_new = jnp.maximum(m_prev, jnp.max(s, axis=-1, keepdims=True))
        alpha = jnp.exp(m_prev - m_new)
        p = jnp.exp(s - m_new)
        l_scr[h] = alpha * l_scr[h] + jnp.sum(p, axis=-1, keepdims=True)
        acc_scr[:, sl] = alpha * acc_scr[:, sl] + jnp.dot(
            p.astype(cd), v_h, preferred_element_type=f32)
        m_scr[h] = m_new

    @pl.when(ki == pl.num_programs(2) - 1)
    def _finalize():
        for h in range(num_heads):
            sl = slice(h * d2, (h + 1) * d2)
            if approx_recip:
                inv = pl.reciprocal(l_scr[h], approx=True)
            else:
                inv = 1.0 / l_scr[h]
            acc_scr[:, sl] = acc_scr[:, sl] * inv
        a = acc_scr[...].astype(cd)                                     # (TQ, 2D)
        out_ref[0] = (jnp.dot(a, wo_ref[...], preferred_element_type=f32)
                      + bo_ref[...]).astype(out_ref.dtype)              # (TQ, 2D)


# ---------------------------------------------------------------------------
# Host-side parameter packing.
# ---------------------------------------------------------------------------
def _pack_params(Wr, Wi, br, bi, num_heads, compute_dtype):
    """Pack the 8 nn.Linear tensors into MXU-friendly block weights.

    Wr, Wi: (4, D, D) in PyTorch (out, in) layout for [q, k, v, out].
    br, bi: (4, D).
    """
    D = Wr.shape[-1]
    d = D // num_heads
    scale = 1.0 / math.sqrt(d)

    # Head-interleave permutation of the 2D complex output channels:
    # [h0: real(d) | imag(d), h1: real(d) | imag(d), ...]
    perm = np.concatenate(
        [np.concatenate([np.arange(h * d, (h + 1) * d),
                         D + np.arange(h * d, (h + 1) * d)])
         for h in range(num_heads)])

    def blk(i):
        wrt, wit = Wr[i].T, Wi[i].T                                   # (in, out)
        w = jnp.concatenate(
            [jnp.concatenate([wrt, wit], axis=1),
             jnp.concatenate([-wit, wrt], axis=1)], axis=0)           # (2D, 2D)
        b = jnp.concatenate([br[i] - bi[i], br[i] + bi[i]])[None, :]  # (1, 2D)
        return w, b

    wq, bq = blk(0)
    wk, bk = blk(1)
    wv, bv = blk(2)
    wo, bo = blk(3)

    wq = wq[:, perm] * scale          # fold the attention scale into Q
    bq = bq[:, perm] * scale
    wkv = jnp.concatenate([wk[:, perm], wv[:, perm]], axis=1)         # (2D, 4D)
    bkv = jnp.concatenate([bk[:, perm], bv[:, perm]], axis=1)         # (1, 4D)
    wo = wo[perm, :]                  # rows permuted to match head-interleaved acc

    cd = compute_dtype
    return (wq.astype(cd), bq.astype(jnp.float32),
            wkv.astype(cd), bkv.astype(jnp.float32),
            wo.astype(cd), bo.astype(jnp.float32))


def _pick_tile(T, candidates):
    for t in candidates:
        if T % t == 0:
            return t
    return T  # TODO(synk): cdiv grid + masked last tile for ragged T.


# ---------------------------------------------------------------------------
# Public wrapper.
# ---------------------------------------------------------------------------
def complex_mha(x_r, x_i, params, num_heads, *, q_tile=None, kv_tile=None,
                compute_dtype=jnp.bfloat16, out_dtype=jnp.float32):
    Wr, Wi, br, bi = params
    B, T, D = x_r.shape
    assert D % num_heads == 0
    head_dim = D // num_heads

    # 256-wide q tiles fill the 256-row MXU on v6e/v7x; 128 is the perfect fit
    # on v5e; small demo shapes fall back to T.  kv tiles stream the sequence.
    if q_tile is None:
        q_tile = _pick_tile(T, (256, 128, 64, 32, 16, 8))
    if kv_tile is None:
        kv_tile = _pick_tile(T, (512, 256, 128, 64, 32, 16, 8))
    assert T % q_tile == 0 and T % kv_tile == 0
    nq, nk = T // q_tile, T // kv_tile

    wq, bq, wkv, bkv, wo, bo = _pack_params(Wr, Wi, br, bi, num_heads,
                                            compute_dtype)

    # One-time host-side concat => lane-dense [real | imag] input slab.
    x2 = jnp.concatenate([x_r, x_i], axis=-1)                       # (B, T, 2D)

    D2, D4 = 2 * D, 4 * D
    cdb = np.dtype(compute_dtype).itemsize
    odb = np.dtype(out_dtype).itemsize

    def vmem_limit(est):
        # Generous headroom; per-generation physical caps (<= ~56 MiB usable on
        # v7x) should be honored by choosing smaller q_tile/kv_tile, not by
        # raising this blindly.
        return int(max(32 << 20, min(2 * est + (8 << 20), 112 << 20)))

    # ----------------- kernel 1: K/V projection (once per token) -----------
    est_kv = (2 * kv_tile * D2 * 4 + D2 * D4 * cdb + D4 * 4
              + 2 * kv_tile * D4 * cdb + kv_tile * D4 * 4)
    kv = pl.pallas_call(
        functools.partial(_kv_proj_kernel, compute_dtype=compute_dtype),
        out_shape=jax.ShapeDtypeStruct((B, T, D4), compute_dtype),
        grid=(B, nk),
        in_specs=[
            pl.BlockSpec((1, kv_tile, D2), lambda b, t: (b, t, 0)),
            pl.BlockSpec((D2, D4), lambda b, t: (0, 0),
                         pipeline_mode=pl.Buffered(1)),
            pl.BlockSpec((1, D4), lambda b, t: (0, 0),
                         pipeline_mode=pl.Buffered(1)),
        ],
        out_specs=pl.BlockSpec((1, kv_tile, D4), lambda b, t: (b, t, 0)),
        compiler_params=pltpu.CompilerParams(
            dimension_semantics=("parallel", "parallel"),
            vmem_limit_bytes=vmem_limit(est_kv)),
    )(x2, wkv, bkv)

    # ----------------- kernel 2: flash attention + Q / out projections -----
    def _w(shape):
        return pl.BlockSpec(shape, lambda b, qi, ki: (0, 0),
                            pipeline_mode=pl.Buffered(1))

    est_at = (2 * q_tile * D2 * 4                      # x (q rows), double-buffered
              + 2 * kv_tile * D4 * cdb                 # streamed K/V blocks
              + 2 * D2 * D2 * cdb + 2 * D2 * 4         # wq, wo (single-buffered) + biases
              + 2 * q_tile * D2 * odb                  # output block
              + q_tile * D2 * (cdb + 4)                # q scratch + acc scratch
              + 2 * num_heads * q_tile * 128 * 4       # m/l scratch (lane-padded)
              + 4 * q_tile * kv_tile * 4               # score/prob temporaries
              + q_tile * D2 * 4)

    kernel = functools.partial(
        _attn_kernel, num_heads=num_heads, head_dim=head_dim,
        compute_dtype=compute_dtype,
        approx_recip=(compute_dtype != jnp.float32))

    out = pl.pallas_call(
        kernel,
        out_shape=jax.ShapeDtypeStruct((B, T, D2), out_dtype),
        grid=(B, nq, nk),
        in_specs=[
            pl.BlockSpec((1, q_tile, D2), lambda b, qi, ki: (b, qi, 0)),   # x (q rows)
            pl.BlockSpec((1, kv_tile, D4), lambda b, qi, ki: (b, ki, 0)),  # projected K/V
            _w((D2, D2)),    # W_q block (scale folded in)
            _w((1, D2)),     # b_q
            _w((D2, D2)),    # W_out block
            _w((1, D2)),     # b_out
        ],
        out_specs=pl.BlockSpec((1, q_tile, D2), lambda b, qi, ki: (b, qi, 0)),
        scratch_shapes=[
            pltpu.VMEM((q_tile, D2), compute_dtype),            # projected Q
            pltpu.VMEM((num_heads, q_tile, 1), jnp.float32),    # running max
            pltpu.VMEM((num_heads, q_tile, 1), jnp.float32),    # running sum
            pltpu.VMEM((q_tile, D2), jnp.float32),              # output accumulator
        ],
        compiler_params=pltpu.CompilerParams(
            dimension_semantics=("parallel", "parallel", "arbitrary"),
            vmem_limit_bytes=vmem_limit(est_at)),
    )(x2, kv, wq, bq, wo, bo)

    # Split the lane-dense [real | imag] slab in the wrapper.
    return out[..., :D], out[..., D:]


# ---------------------------------------------------------------------------
# Pure-JAX (f32) reference, mirroring the PyTorch module exactly.
# ---------------------------------------------------------------------------
def reference_cmha(x_r, x_i, params, num_heads):
    Wr, Wi, br, bi = params
    B, T, D = x_r.shape
    d = D // num_heads

    def clin(i, ar, ai):
        real = (ar @ Wr[i].T + br[i]) - (ai @ Wi[i].T + bi[i])
        imag = (ai @ Wr[i].T + br[i]) + (ar @ Wi[i].T + bi[i])
        return real, imag

    qr, qi = clin(0, x_r, x_i)
    kr, ki = clin(1, x_r, x_i)
    vr, vi = clin(2, x_r, x_i)

    def heads(a):
        return a.reshape(B, T, num_heads, d).transpose(0, 2, 1, 3)

    qr, qi, kr, ki, vr, vi = map(heads, (qr, qi, kr, ki, vr, vi))
    scores = (jnp.einsum('bhid,bhjd->bhij', qr, kr)
              + jnp.einsum('bhid,bhjd->bhij', qi, ki)) / math.sqrt(d)
    p = jax.nn.softmax(scores, axis=-1)
    o_r = jnp.einsum('bhij,bhjd->bhid', p, vr)
    o_i = jnp.einsum('bhij,bhjd->bhid', p, vi)
    ar = o_r.transpose(0, 2, 1, 3).reshape(B, T, D)
    ai = o_i.transpose(0, 2, 1, 3).reshape(B, T, D)
    return clin(3, ar, ai)


if __name__ == "__main__":
    B, T, D, H = 2, 8, 32, 4

    key = jax.random.PRNGKey(0)
    k_xr, k_xi, k_wr, k_wi, k_br, k_bi = jax.random.split(key, 6)

    x_r = jax.random.normal(k_xr, (B, T, D), dtype=jnp.float32)
    x_i = jax.random.normal(k_xi, (B, T, D), dtype=jnp.float32)

    # nn.Linear-style init: U(-1/sqrt(in), 1/sqrt(in)); order is [q, k, v, out].
    bound = 1.0 / math.sqrt(D)
    Wr = jax.random.uniform(k_wr, (4, D, D), minval=-bound, maxval=bound,
                            dtype=jnp.float32)
    Wi = jax.random.uniform(k_wi, (4, D, D), minval=-bound, maxval=bound,
                            dtype=jnp.float32)
    br = jax.random.uniform(k_br, (4, D), minval=-bound, maxval=bound,
                            dtype=jnp.float32)
    bi = jax.random.uniform(k_bi, (4, D), minval=-bound, maxval=bound,
                            dtype=jnp.float32)
    params = (Wr, Wi, br, bi)

    ref_r, ref_i = reference_cmha(x_r, x_i, params, H)

    # Exact-semantics check: f32 MXU path uses exact division in the softmax.
    f32_r, f32_i = complex_mha(x_r, x_i, params, H, compute_dtype=jnp.float32)
    jax.block_until_ready((f32_r, f32_i))
    assert jnp.allclose(f32_r, ref_r, atol=5e-3, rtol=5e-3), "f32 real mismatch"
    assert jnp.allclose(f32_i, ref_i, atol=5e-3, rtol=5e-3), "f32 imag mismatch"

    # Production path: bf16 MXU operands, f32 accumulation / softmax.
    out_r, out_i = complex_mha(x_r, x_i, params, H, compute_dtype=jnp.bfloat16)
    jax.block_until_ready((out_r, out_i))
    assert jnp.allclose(out_r, ref_r, atol=1e-1, rtol=1e-1), "bf16 real mismatch"
    assert jnp.allclose(out_i, ref_i, atol=1e-1, rtol=1e-1), "bf16 imag mismatch"

    print("KERNEL_OK")
</pallas_src>

<mosaic_0001>
module attributes {stable_mosaic.version = 11 : i64} {
  func.func @_kv_proj_kernel(%arg0: i32, %arg1: i32, %arg2: memref<1x8x64xf32, #tpu.memory_space<vmem>>, %arg3: memref<64x128xf32, #tpu.memory_space<vmem>>, %arg4: memref<1x128xf32, #tpu.memory_space<vmem>>, %arg5: memref<1x8x128xf32, #tpu.memory_space<vmem>>) attributes {dimension_semantics = [#tpu.dimension_semantics<parallel>, #tpu.dimension_semantics<parallel>], iteration_bounds = array<i64: 2, 1>, scalar_prefetch = 0 : i64, scratch_operands = 0 : i64, tpu.core_type = #tpu.core_type<tc>, window_params = [{transform_indices = @transform_0, window_bounds = array<i64: 1, 8, 64>}, {pipeline_mode = #tpu.pipeline_mode<synchronous>, transform_indices = @transform_1, window_bounds = array<i64: 64, 128>}, {pipeline_mode = #tpu.pipeline_mode<synchronous>, transform_indices = @transform_2, window_bounds = array<i64: 1, 128>}, {transform_indices = @transform_3, window_bounds = array<i64: 1, 8, 128>}]} {
    %c0 = arith.constant 0 : index
    %c0_0 = arith.constant 0 : index
    %c0_1 = arith.constant 0 : index
    %0 = vector.load %arg2[%c0, %c0_0, %c0_1] : memref<1x8x64xf32, #tpu.memory_space<vmem>>, vector<1x8x64xf32>
    %1 = vector.shape_cast %0 : vector<1x8x64xf32> to vector<8x64xf32>
    %c0_2 = arith.constant 0 : index
    %c0_3 = arith.constant 0 : index
    %2 = vector.load %arg3[%c0_2, %c0_3] : memref<64x128xf32, #tpu.memory_space<vmem>>, vector<64x128xf32>
    %cst = arith.constant dense<0.000000e+00> : vector<8x128xf32>
    %3 = tpu.matmul %1, %2, %cst {dimension_numbers = #tpu.dot_dimension_numbers<[1], [0], [0], [1], [0, 0, 1, 1], [], []>} : vector<8x64xf32>, vector<64x128xf32>, vector<8x128xf32> -> vector<8x128xf32>
    %c0_4 = arith.constant 0 : index
    %c0_5 = arith.constant 0 : index
    %4 = vector.load %arg4[%c0_4, %c0_5] : memref<1x128xf32, #tpu.memory_space<vmem>>, vector<1x128xf32>
    %5 = vector.broadcast %4 : vector<1x128xf32> to vector<8x128xf32>
    %6 = arith.addf %3, %5 : vector<8x128xf32>
    %c0_6 = arith.constant 0 : index
    %c0_7 = arith.constant 0 : index
    %c0_8 = arith.constant 0 : index
    %7 = vector.load %arg5[%c0_6, %c0_7, %c0_8] : memref<1x8x128xf32, #tpu.memory_space<vmem>>, vector<1x8x128xf32>
    %8 = vector.shape_cast %7 : vector<1x8x128xf32> to vector<8x128xf32>
    %9 = vector.shape_cast %6 : vector<8x128xf32> to vector<1x8x128xf32>
    tpu.vector_store %arg5[%c0_6, %c0_7, %c0_8], %9 {strides = array<i32>} : memref<1x8x128xf32, #tpu.memory_space<vmem>>, vector<1x8x128xf32>,
    return
  }
  func.func @transform_0(%arg0: i32, %arg1: i32) -> (i32, i32, i32) {
    %c0_i32 = arith.constant 0 : i32
    %c0_i32_0 = arith.constant 0 : i32
    return %arg0, %arg1, %c0_i32 : i32, i32, i32
  }
  func.func @transform_1(%arg0: i32, %arg1: i32) -> (i32, i32) {
    %c0_i32 = arith.constant 0 : i32
    %c0_i32_0 = arith.constant 0 : i32
    %c0_i32_1 = arith.constant 0 : i32
    return %c0_i32, %c0_i32_0 : i32, i32
  }
  func.func @transform_2(%arg0: i32, %arg1: i32) -> (i32, i32) {
    %c0_i32 = arith.constant 0 : i32
    %c0_i32_0 = arith.constant 0 : i32
    %c0_i32_1 = arith.constant 0 : i32
    return %c0_i32, %c0_i32_0 : i32, i32
  }
  func.func @transform_3(%arg0: i32, %arg1: i32) -> (i32, i32, i32) {
    %c0_i32 = arith.constant 0 : i32
    %c0_i32_0 = arith.constant 0 : i32
    return %arg0, %arg1, %c0_i32 : i32, i32, i32
  }
}

</mosaic_0001>

<bundles_post_ra>
// kernel: tpu_custom_call.1
= control target key start
LH: loop header
LB: loop body
LE: loop exit
PB: predicated region body
PF: predicated region fallthrough
CT: control target
= control target key end

     0   :  { %8 = vsyncpa [#allocation3], 0  ;;  %s944_s0 = inlined_call_operand.hbm [shape: f32[2,8,64], index: 0, kind: input, shape index: {}]   ;;  %s945_s1 = inlined_call_operand.hbm [shape: f32[64,128], index: 1, kind: input, shape index: {}]   ;;  %s946_s2 = inlined_call_operand.vmem [shape: f32[1,128], index: 2, kind: input, shape index: {}]   ;;  %s947_s3 = inlined_call_operand.hbm [shape: f32[2,8,128], index: 3, kind: output, shape index: {}]  }
   0x1   :  { %10 = vsyncpa [#allocation3 + $0x1], 0 }
   0x2   :  { %11 = vsyncpa [#allocation6], 0 }
   0x3   :  { %12 = vsyncpa [#allocation4], 0 }
   0x4   :  { %14 = vsyncpa [#allocation4 + $0x1], 0  ;;  %s723_s12 = smov 0   ;;  %s725_s13 = smov 0  }
   0x5   :  { %s727_s14 = smov 0   ;;  %s729_s15 = smov 0  }
   0x6   :  { %s731_s16 = smov 0   ;;  %s733_s17 = smov 0  }
   0x7 LB: > { %s414_s18 = sadd.s32 4294967295, %s693_s17   ;;  %s415_s19 = sadd.s32 4294967294, %s693_s17   ;;  %s693_s17 = sphi %s733_s17, %s20_s17   ;;  %s689_s16 = sphi %s731_s16, %s971_s16   ;;  %s685_s15 = sphi %s729_s15, %s970_s15   ;;  %s681_s14 = sphi %s727_s14, %s969_s14   ;;  %s677_s13 = sphi %s725_s13, %s968_s13   ;;  %s673_s12 = sphi %s723_s12, %s967_s12  }
   0x8   : > { %p54_p0 = scmp.ne.s32.totalorder %s677_s13, %s673_s12  ;;  %p757_p1 = scmp.eq.s32.totalorder %s414_s18, 0 }
   0x9   : > { %p761_p2 = scmp.eq.s32.totalorder %s414_s18, 1  ;;  %p128_p3 = scmp.eq.s32.totalorder %s415_s19, 1 }
   0xa   : > { %s952_s20 = scalar_select %p757_p1, 1, 0 }
   0xb   : > { %s953_s21 = scalar_select %p761_p2, 1, 0 }
   0xc   : > { %p767_p4 = por %p757_p1, %p54_p0  ;;  %p416_p5 = scmp.ge.s32.totalorder %s693_s17, 1 }
   0xd   : > { %p772_p6 = por %p128_p3, %p54_p0  ;;  %p135_p7 = scmp.lt.s32.totalorder %s693_s17, 3 }
   0xe   : > { %s954_s22 = scalar_select %p767_p4, 1, 0 }
   0xf   : > { %s955_s23 = scalar_select %p772_p6, 1, 0 }
  0x10   : > { %p777_p8 = pnand %p416_p5, %p135_p7  ;;  %s695_s25 = smov [#allocation5]  }
  0x11   : > { %s147_s26 = sshll.u32 %s695_s25, 4  ;;  %s32_s28 = sadd.s32 1, %s689_s16  ;;  %s148_s26 = int_to_ptr.vmem [resolvable:$true] %s147_s26 }
  0x12   : > { %s956_s24 = scalar_select %p777_p8, 1, 0 }
  0x13   : > { %p479_p9 = pneg %p777_p8  ;;  %s549_s4 = scalar_lea.hbm %s945_s1, 1024 }
  0x14   : > { %p550_p12 = scmp.ne.s32.totalorder %s945_s1, %s549_s4  ;;  %p556_p5 = scmp.lt.u32.totalorder %s549_s4, %s945_s1 }
  0x15   : > { %p786_p11 = pnand %p479_p9, %p757_p1 }
  0x17   : > { %p551_p13 = pneg %p786_p11 }
  0x19   : > { %p552_p0 = pnand %p551_p13, %p550_p12 }
  0x1b   : > { %p553_p3 = pneg %p552_p0 }
  0x1d   : > { %p558_p7 = pnand %p556_p5, %p553_p3 }
  0x1f   : > { %561 = shalt.err (!%p558_p7)
}
  0x20   : > { %s562_s9 = scalar_lea.vmem %s148_s26, 1024  ;;  %p570_p1 = scmp.lt.s32.totalorder %s148_s26, %s148_s26 }
  0x21   : > { %p563_p9 = scmp.ne.s32.totalorder %s148_s26, %s562_s9  ;;  %p571_p4 = scmp.lt.s32.totalorder %s562_s9, %s562_s9 }
  0x23   : > { %p565_p10 = pnand %p563_p9, %p551_p13  ;;  %p572_p8 = por %p571_p4, %p570_p1 }
  0x25   : > { %p566_p6 = pneg %p565_p10 }
  0x27   : > { %p573_p2 = pnand %p572_p8, %p566_p6 }
  0x29   : > { %576 = shalt.err (!%p573_p2)
}
  0x2a   : > { %s696_s10 = smov 128   ;;  %s697_s11 = smov 8  }
  0x2b   : > { %482 = dma.hbm_to_vmem [thread:$0]  (!%p786_p11), %s945_s1, 1024, %s148_s26, [#allocation6], %s696_s10, %s696_s10, %s697_s11  }
  0x2c   : > { %p34_p1 = scmp.ge.s32.totalorder %s32_s28, 2  ;;  %s41_s25 = sadd.s32 1, %s681_s14 }
  0x2d   : > { %p48_p2 = scmp.ne.s32.totalorder %s681_s14, %s677_s13  ;;  %p49_p4 = scmp.eq.s32.totalorder %s693_s17, 0 }
  0x2e   : > { %s973_s28 = smov (%p34_p1, %s32_s28), 0  ;;  %p959_p8 = scmp.ne.s32.totalorder %s953_s21, 0 }
  0x2f   : > { %p813_p6 = por %p49_p4, %p48_p2  ;;  %s36_s27 = ssub.s32 %s689_s16, %s973_s28 }
  0x30   : > { %p819_p10 = por %p959_p8, %p48_p2  ;;  %p492_p12 = scmp.lt.s32.totalorder %s693_s17, 2 }
  0x31   : > { %p39_p11 = scmp.eq.s32.totalorder %s36_s27, 0  ;;  %s164_s26 = sand.u32 1, %s681_s14  }
  0x32   : > { %s419_s4 = sshll.u32 %s164_s26, 3  ;;  %s420_s6 = sshll.u32 %s689_s16, 7 }
  0x33   : > { %s828_s5 = scalar_select %p39_p11, %s681_s14, %s41_s25  }
  0x34   : > { %s834_s9 = scalar_lea.hbm %s944_s0, %s420_s6  ;;  %s168_s21 = scalar_lea.vmem [#allocation2], %s419_s4 }
  0x35   : > { %s176_s10 = sshll.u32 %s168_s21, 4  ;;  %p840_p13 = pnand %p492_p12, %p813_p6  ;;  %s836_s10 = int_to_ptr.vmem [resolvable:$true] %s176_s10 }
  0x36   : > { %s165_s18 = scalar_lea.sflag [#allocation3], %s164_s26  ;;  %s577_s19 = scalar_lea.hbm %s834_s9, 128 }
  0x37   : > { %p578_p0 = scmp.ne.s32.totalorder %s834_s9, %s577_s19  ;;  %p579_p3 = pneg %p840_p13 }
  0x38   : > { %s582_s4 = scalar_lea.hbm %s944_s0, 256  ;;  %p583_p9 = scmp.lt.u32.totalorder %s834_s9, %s944_s0 }
  0x39   : > { %p580_p5 = pnand %p579_p3, %p578_p0  ;;  %p584_p1 = scmp.lt.u32.totalorder %s582_s4, %s577_s19 }
  0x3a   : > { %p586_p4 = scmp.lt.u32.totalorder %s577_s19, %s834_s9 }
  0x3b   : > { %p581_p7 = pneg %p580_p5  ;;  %p585_p2 = por %p584_p1, %p583_p9 }
  0x3d   : > { %p587_p6 = por %p586_p4, %p585_p2 }
  0x3f   : > { %p588_p8 = pnand %p587_p6, %p581_p7 }
  0x41   : > { %591 = shalt.err (!%p588_p8)
}
  0x42   : > { %s592_s26 = scalar_lea.vmem %s836_s10, 128  ;;  %s698_s7 = smov [#allocation2]  }
  0x43   : > { %p593_p12 = scmp.ne.s32.totalorder %s836_s10, %s592_s26  ;;  %s597_s8 = sshll.u32 %s698_s7, 4  ;;  %s598_s8 = int_to_ptr.vmem [resolvable:$false] %s597_s8 }
  0x44   : > { %s599_s21 = scalar_lea.vmem %s598_s8, 256  ;;  %p600_p5 = scmp.lt.s32.totalorder %s836_s10, %s598_s8 }
  0x45   : > { %p595_p11 = pnand %p593_p12, %p579_p3  ;;  %p601_p9 = scmp.lt.s32.totalorder %s599_s21, %s592_s26 }
  0x47   : > { %p596_p0 = pneg %p595_p11  ;;  %p602_p1 = por %p601_p9, %p600_p5 }
  0x49   : > { %p603_p2 = pnand %p602_p1, %p596_p0 }
  0x4b   : > { %606 = shalt.err (!%p603_p2)
}
  0x4c   : > { %486 = dma.hbm_to_vmem [thread:$0]  (!%p840_p13), %s834_s9, 128, %s836_s10, %s165_s18  }
  0x4d   : > { %p962_p7 = scmp.ne.s32.totalorder %s956_s24, 0 }
  0x4e   : > { %s872_s19 = sand.u32 (!%p962_p7), 1, %s677_s13   ;;  %p963_p3 = scmp.ne.s32.totalorder (!%p962_p7), %s954_s22, 0 }
  0x4f   : > { %185 = sbr.rel (%p962_p7) target bundleno = 337 (0x151), region = 32  ;;  %s422_s25 = sshll.u32 (!%p962_p7), %s872_s19, 3 }
  0x50   : > { %s188_s27 = scalar_lea.sflag (!%p962_p7), [#allocation3], %s872_s19  ;;  %s191_s4 = scalar_lea.vmem (!%p962_p7), [#allocation2], %s422_s25 }
  0x56   : > { %660 = dma.done.wait (%p963_p3), %s188_s27, 128  }
  0x57   : > { %662 = vsyncadd (%p963_p3), %s188_s27, 4294967168  ;;  %p964_p13 = scmp.ne.s32.totalorder %s952_s20, 0 }
  0x59   : > { %664 = dma.done.wait (%p964_p13), [#allocation6], 1024  }
  0x5a   : > { %666 = vsyncadd (%p964_p13), [#allocation6], 4294966272  ;;  %v699_v0 = vmov 0.0|0.0   ;;  %vm700_vm0 = vmmov 0   ;;  %v701_v1 = vmov 0.0   ;;  %v219_v2 = vld [vmem:[#allocation5] sm:$0xff] }
  0x5b   : > { %459 = vmatprep.subr.bf16.mxu0 %v699_v0  ;;  %456 = vmatprep.mubr.msk.f32.mxu0 %vm700_vm0, %v701_v1  ;;  %v220_v3 = vld [vmem:[#allocation5 + $0x8] sm:$0xff]  ;;  %v221_v4 = vld [vmem:[#allocation5 + $0x10] sm:$0xff]  ;;  %v222_v6 = vld [vmem:[#allocation5 + $0x18] sm:$0xff]  ;;  %vm234_vm1 = vcmask 523264   ;;  %s428_s24 = sshll.u32 %s685_s15, 7  ;;  %s217_s9 = scalar_lea.vmem [#allocation7], %s422_s25 }
  0x5c   : > { %v460_v5 = vpack.c.bf16 %v220_v3, %v219_v2  ;;  %v463_v7 = vpack.c.bf16 %v222_v6, %v221_v4  ;;  %v223_v8 = vld [vmem:[#allocation5 + $0x20] sm:$0xff]  ;;  %v224_v9 = vld [vmem:[#allocation5 + $0x28] sm:$0xff]  ;;  %v225_v11 = vld [vmem:[#allocation5 + $0x30] sm:$0xff]  ;;  %s324_s10 = sshll.u32 %s217_s9, 4  ;;  %s895_s29 = scalar_lea.hbm %s947_s3, %s428_s24  ;;  %s897_s10 = int_to_ptr.vmem [resolvable:$true] %s324_s10 }
  0x5d   : > { %v466_v10 = vpack.c.bf16 %v224_v9, %v223_v8  ;;  %v226_v12 = vld [vmem:[#allocation5 + $0x38] sm:$0xff]  ;;  %v425_v15 = vld [vmem:[%s946_s2] ss:$0 sm:$0xff]  ;;  %s310_s6 = scalar_lea.sflag [#allocation4], %s872_s19  ;;  %s607_s26 = scalar_lea.vmem %s897_s10, 128 }
  0x5e   : > { %461 = vmatpush3.bf16.msra.mxu0 %v460_v5  ;;  %v469_v13 = vpack.c.bf16 %v226_v12, %v225_v11  ;;  %v218_v14 = vld [vmem:[%s191_s4] sm:$0xff]  ;;  %p608_p4 = scmp.ne.s32.totalorder %s897_s10, %s607_s26  ;;  %s702_s15 = smov [#allocation7]  }
  0x5f   : > { %462 = vmatprep.subr.bf16.mxu0 %v699_v0  ;;  %s611_s7 = sshll.u32 %s702_s15, 4  ;;  %s612_s7 = int_to_ptr.vmem [resolvable:$false] %s611_s7 }
  0x60   : > { %p609_p6 = pnand %p608_p4, %p819_p10  ;;  %s613_s8 = scalar_lea.vmem %s612_s7, 256 }
  0x61   : > { %p614_p12 = scmp.lt.s32.totalorder %s897_s10, %s612_s7  ;;  %p615_p11 = scmp.lt.s32.totalorder %s613_s8, %s607_s26 }
  0x62   : > { %464 = vmatpush3.bf16.msra.mxu0 %v463_v7  ;;  %p610_p8 = pneg %p609_p6 }
  0x63   : > { %465 = vmatprep.subr.bf16.mxu0 %v699_v0  ;;  %p616_p0 = por %p615_p11, %p614_p12 }
  0x65   : > { %p617_p5 = pnand %p616_p0, %p610_p8 }
  0x66   : > { %467 = vmatpush3.bf16.msra.mxu0 %v466_v10 }
  0x67   : > { %468 = vmatprep.subr.bf16.mxu0 %v699_v0 }
  0x6a   : > { %470 = vmatpush3.bf16.msra.mxu0 %v469_v13 }
  0x6d   : > { %457 = vmatmul.mubr.msk.f32.vlgmr.msra.gmra.mrb[0].mxu0 %vm234_vm1, %v218_v14 }
 0x140   : > { %v304_v16 = vpop.f32.mrb[0].mxu0 }
 0x141   : > { %v305_v17 = vadd.f32 %v425_v15, %v304_v16  ;;  %v458_v18 = vpop.f32.mrb[1].mxu0 }
 0x143   : > { %308 = vst [vmem:[%s217_s9] sm:$0xff] %v305_v17 }
 0x144   : > { %620 = shalt.err (!%p617_p5)
}
 0x145   : > { %s621_s21 = scalar_lea.hbm %s895_s29, 128  ;;  %s625_s27 = scalar_lea.hbm %s947_s3, 256 }
 0x146   : > { %p622_p9 = scmp.ne.s32.totalorder %s895_s29, %s621_s21  ;;  %p626_p7 = scmp.lt.u32.totalorder %s895_s29, %s947_s3 }
 0x147   : > { %p627_p3 = scmp.lt.u32.totalorder %s625_s27, %s621_s21  ;;  %p629_p4 = scmp.lt.u32.totalorder %s621_s21, %s895_s29 }
 0x148   : > { %p623_p1 = pnand %p622_p9, %p819_p10 }
 0x149   : > { %p628_p13 = por %p627_p3, %p626_p7 }
 0x14a   : > { %p624_p2 = pneg %p623_p1 }
 0x14b   : > { %p630_p6 = por %p629_p4, %p628_p13 }
 0x14d   : > { %p631_p8 = pnand %p630_p6, %p624_p2 }
 0x14f   : > { %634 = shalt.err (!%p631_p8)
}
 0x150   : > { %477 = dma.vmem_to_hbm [thread:$0]  (%p819_p10), %s897_s10, 128, %s895_s29, %s310_s6  }
 0x151 PF: > { %s336_s22 = sand.u32 1, %s673_s12   ;;  %p965_p12 = scmp.ne.s32.totalorder %s955_s23, 0 }
 0x152   : > { %p966_p11 = scmp.ge.s32.totalorder %s693_s17, 2  ;;  %s337_s24 = scalar_lea.sflag [#allocation4], %s336_s22 }
 0x154   : > { %p488_p0 = pnand %p966_p11, %p965_p12 }
 0x156   : > { %668 = dma.done.wait (!%p488_p0), %s337_s24, 128  }
 0x157   : > { %670 = vsyncadd (!%p488_p0), %s337_s24, 4294967168  ;;  %s20_s17 = sadd.s32 1, %s693_s17   ;;  %s967_s12 = smov %s677_s13 }
 0x158   : > { %p17_p5 = scmp.ge.s32.totalorder %s20_s17, 4   ;;  %s968_s13 = smov %s681_s14 }
 0x159   : > { %s969_s14 = smov %s828_s5  ;;  %s970_s15 = smov %s689_s16 }
 0x15a   : > { %s971_s16 = smov %s973_s28  ;;  %19 = sbr.rel (!%p17_p5) target bundleno = 7 (0x7), region = 81 }
 0x161   :  { %342 = vsyncpa [#allocation3], 1 }
 0x162   :  { %344 = vsyncpa [#allocation3 + $0x1], 1 }
 0x163   :  { %345 = vsyncpa [#allocation6], 1 }
 0x164   :  { %346 = vsyncpa [#allocation4], 1 }
 0x165   :  { %348 = vsyncpa [#allocation4 + $0x1], 1 }

</bundles_post_ra>
